<compile_context>
chip_gen: v7x
topology: tpu7x:2x2x1
jax: 0.10.0
libtpu: 0.0.40
codegen_flags: <defaults>
</compile_context>

<pallas_src>
import functools
import math

import jax
import jax.numpy as jnp
from jax.experimental import pallas as pl
from jax.experimental.pallas import tpu as pltpu


def _softplus(x):
    # numerically stable softplus: max(x, 0) + log1p(exp(-|x|))
    return jnp.maximum(x, 0.0) + jnp.log1p(jnp.exp(-jnp.abs(x)))


def _sac_policy_kernel(xT_ref, w_fc_ref, b_fc_ref, w_head_ref, b_head_ref,
                       epsT_ref, out_ref, *, action_dim, action_bound):
    A = action_dim
    xT = xT_ref[...]                                        # (S, bm)

    # hidden = relu(W_fc @ x^T + b_fc)         -> (H, bm), batch on lanes
    h = jnp.dot(w_fc_ref[...], xT, preferred_element_type=jnp.float32)
    h = jnp.maximum(h + b_fc_ref[...], 0.0)

    # fused mu/std heads in a single matmul    -> (2A, bm)
    head = jnp.dot(w_head_ref[...], h, preferred_element_type=jnp.float32)
    head = head + b_head_ref[...]

    mu = head[:A, :]                                        # (A, bm)
    std = _softplus(head[A:, :])                            # (A, bm)

    # reparameterized sample: mu + std * eps
    eps = epsT_ref[...]                                     # (A, bm)
    sample = mu + std * eps

    # Normal(mu, std).log_prob(sample) = -0.5*eps^2 - log(std) - 0.5*log(2*pi)
    logp = -0.5 * eps * eps - jnp.log(std) - 0.5 * math.log(2.0 * math.pi)

    # tanh squash + change-of-variables correction (same 1e-7 eps as torch)
    a = jnp.tanh(sample)
    logp = logp - jnp.log(1.0 - a * a + 1e-07)
    action = a * action_bound

    # single lane-dense output slab: rows [0:A) = action, rows [A:2A) = logp
    out_ref[...] = jnp.concatenate([action, logp], axis=0)  # (2A, bm)


def _pick_block_b(B):
    """Batch tile: full batch for small B; otherwise an MXU-aligned tile that
    keeps VMEM modest (v7x has 64 MiB) and gives >=2 parallel grid steps."""
    if B <= 256:
        return B
    for cand in (2048, 1024, 512, 256, 128):
        if B % cand == 0 and B // cand >= 2:
            return cand
    return B


def prepare_kernel_params(params):
    """Build kernel-layout params (done once) from torch-style Linear params:
       w_fc (H,S), b_fc (H,), w_mu (A,H), b_mu (A,), w_std (A,H), b_std (A,)."""
    H = params["w_fc"].shape[0]
    A = params["w_mu"].shape[0]
    return dict(
        w_fc=params["w_fc"],                                   # (H, S)
        b_fc=params["b_fc"].reshape(H, 1),                     # (H, 1)
        w_head=jnp.concatenate([params["w_mu"], params["w_std"]], axis=0),  # (2A, H)
        b_head=jnp.concatenate([params["b_mu"], params["b_std"]],
                               axis=0).reshape(2 * A, 1),      # (2A, 1)
    )


def sac_policy_forward(x, kparams, eps, action_bound, *, block_b=None):
    """SAC policy forward pass with a Pallas TPU kernel.

    x:       (B, state_dim) float32
    kparams: output of prepare_kernel_params
    eps:     (B, action_dim) standard normal noise (rsample noise)
    returns (action, log_prob), both (B, action_dim)
    """
    B, S = x.shape
    H = kparams["w_fc"].shape[0]
    A2 = kparams["w_head"].shape[0]
    A = A2 // 2

    if block_b is None:
        block_b = _pick_block_b(B)
    assert B % block_b == 0, (B, block_b)
    grid = (B // block_b,)

    # layout plumbing: batch on the lane axis
    xT = x.T                                                   # (S, B)
    epsT = eps.T                                               # (A, B)

    kernel = functools.partial(_sac_policy_kernel,
                               action_dim=A, action_bound=action_bound)

    out = pl.pallas_call(
        kernel,
        out_shape=jax.ShapeDtypeStruct((A2, B), jnp.float32),
        grid=grid,
        in_specs=[
            pl.BlockSpec((S, block_b), lambda i: (0, i)),      # x^T: tiled on batch
            pl.BlockSpec((H, S), lambda i: (0, 0)),            # w_fc (resident)
            pl.BlockSpec((H, 1), lambda i: (0, 0)),            # b_fc
            pl.BlockSpec((A2, H), lambda i: (0, 0)),           # fused head weight
            pl.BlockSpec((A2, 1), lambda i: (0, 0)),           # fused head bias
            pl.BlockSpec((A, block_b), lambda i: (0, i)),      # eps^T: tiled on batch
        ],
        out_specs=pl.BlockSpec((A2, block_b), lambda i: (0, i)),
        compiler_params=pltpu.CompilerParams(
            dimension_semantics=("parallel",)),
    )(xT, kparams["w_fc"], kparams["b_fc"],
      kparams["w_head"], kparams["b_head"], epsT)

    action = out[:A, :].T                                      # (B, A)
    log_prob = out[A:, :].T                                    # (B, A)
    return action, log_prob


def init_params(key, state_dim, hidden_dim, action_dim):
    """Torch-style nn.Linear init (uniform +-1/sqrt(fan_in)), torch layout."""
    ks = jax.random.split(key, 6)

    def lin(kw, kb, fan_in, fan_out):
        bound = 1.0 / math.sqrt(fan_in)
        w = jax.random.uniform(kw, (fan_out, fan_in), jnp.float32, -bound, bound)
        b = jax.random.uniform(kb, (fan_out,), jnp.float32, -bound, bound)
        return w, b

    w_fc, b_fc = lin(ks[0], ks[1], state_dim, hidden_dim)
    w_mu, b_mu = lin(ks[2], ks[3], hidden_dim, action_dim)
    w_std, b_std = lin(ks[4], ks[5], hidden_dim, action_dim)
    return dict(w_fc=w_fc, b_fc=b_fc, w_mu=w_mu, b_mu=b_mu,
                w_std=w_std, b_std=b_std)


def reference_forward(x, params, eps, action_bound):
    """Pure-JAX reference matching the torch module semantics exactly."""
    h = jax.nn.relu(x @ params["w_fc"].T + params["b_fc"])
    mu = h @ params["w_mu"].T + params["b_mu"]
    std = jax.nn.softplus(h @ params["w_std"].T + params["b_std"])
    sample = mu + std * eps
    logp = -0.5 * eps * eps - jnp.log(std) - 0.5 * math.log(2.0 * math.pi)
    action = jnp.tanh(sample)
    logp = logp - jnp.log(1.0 - action * action + 1e-07)
    return action * action_bound, logp


if __name__ == "__main__":
    # small shapes consistent with the module's forward
    batch, state_dim, hidden_dim, action_dim = 8, 16, 32, 4
    action_bound = 2.0

    key = jax.random.PRNGKey(0)
    k_params, k_x, k_eps = jax.random.split(key, 3)

    params = init_params(k_params, state_dim, hidden_dim, action_dim)
    kparams = prepare_kernel_params(params)

    x = jax.random.normal(k_x, (batch, state_dim), jnp.float32)
    # rsample noise (generated in JAX; same role as torch's rsample epsilon)
    eps = jax.random.normal(k_eps, (batch, action_dim), jnp.float32)

    action, log_prob = sac_policy_forward(x, kparams, eps, action_bound)
    jax.block_until_ready((action, log_prob))

    # sanity check against the pure-JAX / torch-semantics reference
    ref_action, ref_logp = reference_forward(x, params, eps, action_bound)
    assert jnp.allclose(action, ref_action, atol=1e-5, rtol=1e-5)
    assert jnp.allclose(log_prob, ref_logp, atol=1e-5, rtol=1e-5)

    print("KERNEL_OK")
</pallas_src>

<mosaic_0001>
module attributes {stable_mosaic.version = 11 : i64} {
  func.func @_sac_policy_kernel(%arg0: i32, %arg1: memref<16x8xf32, #tpu.memory_space<vmem>>, %arg2: memref<32x16xf32, #tpu.memory_space<vmem>>, %arg3: memref<32x1xf32, #tpu.memory_space<vmem>>, %arg4: memref<8x32xf32, #tpu.memory_space<vmem>>, %arg5: memref<8x1xf32, #tpu.memory_space<vmem>>, %arg6: memref<4x8xf32, #tpu.memory_space<vmem>>, %arg7: memref<8x8xf32, #tpu.memory_space<vmem>>) attributes {dimension_semantics = [#tpu.dimension_semantics<parallel>], iteration_bounds = array<i64: 1>, scalar_prefetch = 0 : i64, scratch_operands = 0 : i64, tpu.core_type = #tpu.core_type<tc>, window_params = [{transform_indices = @transform_0, window_bounds = array<i64: 16, 8>}, {pipeline_mode = #tpu.pipeline_mode<synchronous>, transform_indices = @transform_1, window_bounds = array<i64: 32, 16>}, {pipeline_mode = #tpu.pipeline_mode<synchronous>, transform_indices = @transform_2, window_bounds = array<i64: 32, 1>}, {pipeline_mode = #tpu.pipeline_mode<synchronous>, transform_indices = @transform_3, window_bounds = array<i64: 8, 32>}, {pipeline_mode = #tpu.pipeline_mode<synchronous>, transform_indices = @transform_4, window_bounds = array<i64: 8, 1>}, {transform_indices = @transform_5, window_bounds = array<i64: 4, 8>}, {transform_indices = @transform_6, window_bounds = array<i64: 8, 8>}]} {
    %c0 = arith.constant 0 : index
    %c0_0 = arith.constant 0 : index
    %0 = vector.load %arg1[%c0, %c0_0] : memref<16x8xf32, #tpu.memory_space<vmem>>, vector<16x8xf32>
    %c0_1 = arith.constant 0 : index
    %c0_2 = arith.constant 0 : index
    %1 = vector.load %arg2[%c0_1, %c0_2] : memref<32x16xf32, #tpu.memory_space<vmem>>, vector<32x16xf32>
    %cst = arith.constant dense<0.000000e+00> : vector<32x8xf32>
    %2 = tpu.matmul %1, %0, %cst {dimension_numbers = #tpu.dot_dimension_numbers<[1], [0], [0], [1], [0, 0, 1, 1], [], []>} : vector<32x16xf32>, vector<16x8xf32>, vector<32x8xf32> -> vector<32x8xf32>
    %c0_3 = arith.constant 0 : index
    %c0_4 = arith.constant 0 : index
    %3 = vector.load %arg3[%c0_3, %c0_4] : memref<32x1xf32, #tpu.memory_space<vmem>>, vector<32x1xf32>
    %4 = vector.broadcast %3 : vector<32x1xf32> to vector<32x8xf32>
    %5 = arith.addf %2, %4 : vector<32x8xf32>
    %cst_5 = arith.constant 0.000000e+00 : f32
    %6 = vector.broadcast %cst_5 : f32 to vector<32x8xf32>
    %7 = arith.maximumf %5, %6 : vector<32x8xf32>
    %c0_6 = arith.constant 0 : index
    %c0_7 = arith.constant 0 : index
    %8 = vector.load %arg4[%c0_6, %c0_7] : memref<8x32xf32, #tpu.memory_space<vmem>>, vector<8x32xf32>
    %cst_8 = arith.constant dense<0.000000e+00> : vector<8x8xf32>
    %9 = tpu.matmul %8, %7, %cst_8 {dimension_numbers = #tpu.dot_dimension_numbers<[1], [0], [0], [1], [0, 0, 1, 1], [], []>} : vector<8x32xf32>, vector<32x8xf32>, vector<8x8xf32> -> vector<8x8xf32>
    %c0_9 = arith.constant 0 : index
    %c0_10 = arith.constant 0 : index
    %10 = vector.load %arg5[%c0_9, %c0_10] : memref<8x1xf32, #tpu.memory_space<vmem>>, vector<8x1xf32>
    %11 = vector.broadcast %10 : vector<8x1xf32> to vector<8x8xf32>
    %12 = arith.addf %9, %11 : vector<8x8xf32>
    %13 = vector.extract_strided_slice %12 {offsets = [0, 0], sizes = [4, 8], strides = [1, 1]} : vector<8x8xf32> to vector<4x8xf32>
    %14 = vector.extract_strided_slice %12 {offsets = [4, 0], sizes = [4, 8], strides = [1, 1]} : vector<8x8xf32> to vector<4x8xf32>
    %cst_11 = arith.constant 0.000000e+00 : f32
    %15 = vector.broadcast %cst_11 : f32 to vector<4x8xf32>
    %16 = arith.maximumf %14, %15 : vector<4x8xf32>
    %17 = math.absf %14 : vector<4x8xf32>
    %cst_12 = arith.constant 0.000000e+00 : f32
    %18 = vector.broadcast %cst_12 : f32 to vector<4x8xf32>
    %19 = arith.subf %18, %17 : vector<4x8xf32>
    %20 = math.exp %19 : vector<4x8xf32>
    %21 = math.log1p %20 : vector<4x8xf32>
    %22 = arith.addf %16, %21 : vector<4x8xf32>
    %c0_13 = arith.constant 0 : index
    %c0_14 = arith.constant 0 : index
    %23 = vector.load %arg6[%c0_13, %c0_14] : memref<4x8xf32, #tpu.memory_space<vmem>>, vector<4x8xf32>
    %24 = arith.mulf %22, %23 : vector<4x8xf32>
    %25 = arith.addf %13, %24 : vector<4x8xf32>
    %cst_15 = arith.constant -5.000000e-01 : f32
    %26 = vector.broadcast %cst_15 : f32 to vector<4x8xf32>
    %27 = arith.mulf %26, %23 : vector<4x8xf32>
    %28 = arith.mulf %27, %23 : vector<4x8xf32>
    %29 = math.log %22 : vector<4x8xf32>
    %30 = arith.subf %28, %29 : vector<4x8xf32>
    %cst_16 = arith.constant 0.918938517 : f32
    %31 = vector.broadcast %cst_16 : f32 to vector<4x8xf32>
    %32 = arith.subf %30, %31 : vector<4x8xf32>
    %33 = math.tanh %25 : vector<4x8xf32>
    %34 = arith.mulf %33, %33 : vector<4x8xf32>
    %cst_17 = arith.constant 1.000000e+00 : f32
    %35 = vector.broadcast %cst_17 : f32 to vector<4x8xf32>
    %36 = arith.subf %35, %34 : vector<4x8xf32>
    %cst_18 = arith.constant 1.000000e-07 : f32
    %37 = vector.broadcast %cst_18 : f32 to vector<4x8xf32>
    %38 = arith.addf %36, %37 : vector<4x8xf32>
    %39 = math.log %38 : vector<4x8xf32>
    %40 = arith.subf %32, %39 : vector<4x8xf32>
    %cst_19 = arith.constant 2.000000e+00 : f32
    %41 = vector.broadcast %cst_19 : f32 to vector<4x8xf32>
    %42 = arith.mulf %33, %41 : vector<4x8xf32>
    %43 = tpu.concatenate %42, %40 in 0 : vector<4x8xf32>, vector<4x8xf32> -> vector<8x8xf32>
    %c0_20 = arith.constant 0 : index
    %c0_21 = arith.constant 0 : index
    %44 = vector.load %arg7[%c0_20, %c0_21] : memref<8x8xf32, #tpu.memory_space<vmem>>, vector<8x8xf32>
    tpu.vector_store %arg7[%c0_20, %c0_21], %43 {strides = array<i32>} : memref<8x8xf32, #tpu.memory_space<vmem>>, vector<8x8xf32>,
    return
  }
  func.func @transform_0(%arg0: i32) -> (i32, i32) {
    %c0_i32 = arith.constant 0 : i32
    %c0_i32_0 = arith.constant 0 : i32
    return %c0_i32, %arg0 : i32, i32
  }
  func.func @transform_1(%arg0: i32) -> (i32, i32) {
    %c0_i32 = arith.constant 0 : i32
    %c0_i32_0 = arith.constant 0 : i32
    %c0_i32_1 = arith.constant 0 : i32
    return %c0_i32, %c0_i32_0 : i32, i32
  }
  func.func @transform_2(%arg0: i32) -> (i32, i32) {
    %c0_i32 = arith.constant 0 : i32
    %c0_i32_0 = arith.constant 0 : i32
    %c0_i32_1 = arith.constant 0 : i32
    return %c0_i32, %c0_i32_0 : i32, i32
  }
  func.func @transform_3(%arg0: i32) -> (i32, i32) {
    %c0_i32 = arith.constant 0 : i32
    %c0_i32_0 = arith.constant 0 : i32
    %c0_i32_1 = arith.constant 0 : i32
    return %c0_i32, %c0_i32_0 : i32, i32
  }
  func.func @transform_4(%arg0: i32) -> (i32, i32) {
    %c0_i32 = arith.constant 0 : i32
    %c0_i32_0 = arith.constant 0 : i32
    %c0_i32_1 = arith.constant 0 : i32
    return %c0_i32, %c0_i32_0 : i32, i32
  }
  func.func @transform_5(%arg0: i32) -> (i32, i32) {
    %c0_i32 = arith.constant 0 : i32
    %c0_i32_0 = arith.constant 0 : i32
    return %c0_i32, %arg0 : i32, i32
  }
  func.func @transform_6(%arg0: i32) -> (i32, i32) {
    %c0_i32 = arith.constant 0 : i32
    %c0_i32_0 = arith.constant 0 : i32
    return %c0_i32, %arg0 : i32, i32
  }
}

</mosaic_0001>

<bundles_post_ra>
// kernel: tpu_custom_call.1
= control target key start
LH: loop header
LB: loop body
LE: loop exit
PB: predicated region body
PF: predicated region fallthrough
CT: control target
= control target key end

     0   :  { %vm54_vm0 = vcmask 130048   ;;  %v388_v4 = vmov 0   ;;  %s483_s0 = inlined_call_operand.vmem [shape: f32[16,8], index: 0, kind: input, shape index: {}]   ;;  %s484_s1 = inlined_call_operand.vmem [shape: f32[32,16], index: 1, kind: input, shape index: {}]   ;;  %s485_s2 = inlined_call_operand.vmem [shape: f32[32,1], index: 2, kind: input, shape index: {}]   ;;  %s486_s3 = inlined_call_operand.vmem [shape: f32[8,32], index: 3, kind: input, shape index: {}]   ;;  %s487_s4 = inlined_call_operand.vmem [shape: f32[8,1], index: 4, kind: input, shape index: {}]   ;;  %s488_s5 = inlined_call_operand.vmem [shape: f32[4,8], index: 5, kind: input, shape index: {}]   ;;  %s489_s6 = inlined_call_operand.hbm [shape: f32[8,8], index: 6, kind: output, shape index: {}]  }
   0x1   :  { %v24_v0 = vld [vmem:[%s483_s0] sm:$0xff]  ;;  %v25_v1 = vld [vmem:[%s483_s0 + $0x8] sm:$0xff]  ;;  %352 = vset.pattern.permute.xlu0 %v388_v4  ;;  %353 = vset.pattern.permute.xlu1 %v388_v4  ;;  %v32_v6 = vld [vmem:[%s485_s2 + $0x10] sm:$0xff] }
   0x2   :  { %v26_v2 = vld [vmem:[%s484_s1] sm:$0xff]  ;;  %v337_v3 = vpack.c.bf16 %v25_v1, %v24_v0 }
   0x3   :  { %320 = vmatprep.mubr.msk.f32.mxu0 %vm54_vm0, %v26_v2  ;;  %v30_v5 = vld [vmem:[%s485_s2] sm:$0xff] }
   0x4   :  { %338 = vmatprep.subr.bf16.mxu0 %v337_v3  ;;  %36 = vperm.xlu0 %352, %v30_v5  }
   0x5   :  { %11 = vsyncpa [#allocation3], 0  ;;  %340 = vmatpush3.bf16.msra.mxu0 %v337_v3  ;;  %v27_v7 = vld [vmem:[%s484_s1 + $0x8] sm:$0xff]  ;;  %46 = vperm.xlu1 %353, %v32_v6   ;;  %v28_v9 = vld [vmem:[%s484_s1 + $0x10] sm:$0xff]  ;;  %v389_v13 = vmov 0.0|0.0   ;;  %vm390_vm1 = vmmov 0  }
   0x6   :  { %v31_v8 = vld [vmem:[%s485_s2 + $0x8] sm:$0xff]  ;;  %v33_v10 = vld [vmem:[%s485_s2 + $0x18] sm:$0xff]  ;;  %v157_v12 = vld [vmem:[%s487_s4] sm:$0xff]  ;;  %341 = vmatprep.subr.bf16.mxu1 %v389_v13  ;;  %v391_v14 = vmov 0.0   ;;  %vm163_vm2 = vcmask 261120   ;;  %vm281_vm4 = vcmask 1043456  }
   0x7   :  { %v29_v11 = vld [vmem:[%s484_s1 + $0x18] sm:$0xff]  ;;  %334 = vmatprep.mubr.msk.f32.mxu1 %vm390_vm1, %v391_v14  ;;  %v156_v33 = vld [vmem:[%s486_s3] sm:$0xff]  ;;  %s392_s3 = smov [#allocation2]   ;;  %vm283_vm5 = vcmask 64512  }
   0x8   :  { %321 = vmatmul.mubr.msk.f32.vlgmr.msra.gmra.mrb[0].mxu0 %vm54_vm0, %v27_v7  ;;  %41 = vperm.xlu0 %352, %v31_v8   ;;  %v252_v46 = vld [vmem:[%s488_s5] sm:$0xf]  ;;  %s291_s5 = sshll.u32 %s392_s3, 4  ;;  %s292_s5 = int_to_ptr.vmem [resolvable:$true] %s291_s5 }
   0x9   :  { %323 = vmatprep.mubr.msk.f32.mxu0 %vm54_vm0, %v28_v9  ;;  %51 = vperm.xlu1 %353, %v33_v10   ;;  %v254_v51 = vrot.slane %v252_v46, 4  ;;  %v261_v62 = vmul.f32 -0.5, %v252_v46  ;;  %s364_s19 = scalar_lea.vmem %s292_s5, 128  ;;  %p369_p1 = scmp.lt.s32.totalorder %s292_s5, %s292_s5 }
   0xa   :  { %p365_p0 = scmp.ne.s32.totalorder %s292_s5, %s364_s19  ;;  %p370_p2 = scmp.lt.s32.totalorder %s364_s19, %s364_s19 }
   0xb   :  { %v262_v0 = vmul.f32 %v261_v62, %v252_v46 }
   0xc   :  { %324 = vmatmul.mubr.msk.f32.gmra.mrb[2].mxu0 %vm54_vm0, %v29_v11  ;;  %160 = vperm.xlu0 %352, %v157_v12   ;;  %p371_p3 = por %p370_p2, %p369_p1 }
   0xe   :  { %p372_p4 = pnand %p371_p3, %p365_p0 }
  0x83   :  { %v37_v15 = vpop.permute.xlu0 %36 }
  0x84   :  { %v47_v16 = vpop.permute.xlu1 %46 }
  0x87   :  { %v42_v17 = vpop.permute.xlu0 %41 }
  0x88   :  { %v52_v23 = vpop.permute.xlu1 %51 }
  0x8b   :  { %v161_v34 = vpop.permute.xlu0 %160 }
  0xdb   :  { %v322_v18 = vpop.f32.mrb[0].mxu0 }
  0xdc   :  { %v139_v19 = vadd.f32 %v322_v18, %v42_v17  ;;  %v133_v20 = vpop.f32.mrb[1].mxu0 }
  0xdd   :  { %v134_v21 = vadd.f32 %v133_v20, %v37_v15 }
  0xde   :  { %v153_v22 = vmax.f32 %v139_v19, 0.0 }
  0xdf   :  { %v152_v24 = vmax.f32 %v134_v21, 0.0  ;;  %v325_v25 = vpop.f32.mrb[2].mxu0 }
  0xe0   :  { %v149_v26 = vadd.f32 %v325_v25, %v52_v23  ;;  %v143_v27 = vpop.f32.mrb[3].mxu0 }
  0xe1   :  { %v144_v28 = vadd.f32 %v143_v27, %v47_v16  ;;  %v342_v29 = vpack.c.bf16 %v153_v22, %v152_v24 }
  0xe2   :  { %v155_v30 = vmax.f32 %v149_v26, 0.0 }
  0xe3   :  { %v154_v31 = vmax.f32 %v144_v28, 0.0  ;;  %343 = vmatpush3.bf16.msra.mxu1 %v342_v29 }
  0xe4   :  { %344 = vmatprep.subr.bf16.mxu1 %v389_v13 }
  0xe5   :  { %v345_v32 = vpack.c.bf16 %v155_v30, %v154_v31 }
  0xe7   :  { %346 = vmatpush3.bf16.msra.mxu1 %v345_v32 }
  0xea   :  { %335 = vmatmul.mubr.msk.f32.vlgmr.msra.gmra.mrb[0].mxu1 %vm163_vm2, %v156_v33 }
 0x1bd   :  { %v233_v35 = vpop.f32.mrb[0].mxu1 }
 0x1be   :  { %v234_v36 = vadd.f32 %v233_v35, %v161_v34  ;;  %v336_v37 = vpop.f32.mrb[1].mxu1 }
 0x1c0   :  { %v238_v38 = vand.u32 2147483647, %v234_v36  ;;  %v237_v50 = vmax.f32 %v234_v36, 0.0 }
 0x1c2   :  { %v239_v39 = vsub.f32 0.0, %v238_v38 }
 0x1c4   :  { %v240_v40 = vmul.f32 1.442695, %v239_v39 }
 0x1c6   :  { %354 = vpow2.f32 %v240_v40 }
 0x1d0   :  { %v355_v41 = vpop.eup %354 }
 0x1d1   :  { %v242_v42 = vadd.f32 1.0, %v355_v41  ;;  %v245_v43 = vmul.f32 -0.5, %v355_v41  ;;  %v248_v45 = vand.u32 2147483647, %v355_v41 }
 0x1d3   :  { %356 = vlog2.f32 %v242_v42  ;;  %v246_v44 = vadd.f32 1.0, %v245_v43  ;;  %vm249_vm3 = vcmp.lt.f32.partialorder %v248_v45, 0.0004427343 }
 0x1d5   :  { %v247_v49 = vmul.f32 %v355_v41, %v246_v44 }
 0x1dd   :  { %v357_v47 = vpop.eup %356 }
 0x1de   :  { %v244_v48 = vmul.f32 0.6931472, %v357_v47 }
 0x1e0   :  { %v250_v52 = vsel %vm249_vm3, %v247_v49, %v244_v48 }
 0x1e1   :  { %v251_v53 = vadd.f32 %v250_v52, %v237_v50 }
 0x1e3   :  { %v256_v54 = vmul.f32 %v254_v51, %v251_v53 }
 0x1e5   :  { %v258_v55 = vrot.slane %v256_v54, 4 }
 0x1e7   :  { %v260_v56 = vadd.f32 %v258_v55, %v234_v36 }
 0x1e9   :  { %358 = vtanh.f32 %v260_v56 }
 0x1ea   :  { %360 = vlog2.f32 %v251_v53 }
 0x1f3   :  { %v359_v57 = vpop.eup %358 }
 0x1f4   :  { %v271_v58 = vmul.f32 %v359_v57, %v359_v57  ;;  %v361_v59 = vpop.eup %360  ;;  %v277_v7 = vmul.f32 2.0, %v359_v57 }
 0x1f5   :  { %v264_v63 = vmul.f32 0.6931472, %v361_v59 }
 0x1f6   :  { %v272_v60 = vsub.f32 1.0, %v271_v58 }
 0x1f7   :  { %v266_v1 = vrot.slane %v264_v63, 4 }
 0x1f8   :  { %v273_v61 = vadd.f32 1e-07, %v272_v60 }
 0x1f9   :  { %v268_v2 = vsub.f32 %v262_v0, %v266_v1 }
 0x1fa   :  { %362 = vlog2.f32 %v273_v61 }
 0x1fb   :  { %v304_v4 = vadd.f32 -0.9189385, %v268_v2 }
 0x204   :  { %v363_v3 = vpop.eup %362 }
 0x205   :  { %v275_v5 = vmul.f32 0.6931472, %v363_v3 }
 0x207   :  { %v276_v6 = vsub.f32 %v304_v4, %v275_v5 }
 0x209   :  { %v279_v8 = vrot.slane %v276_v6, 4 }
 0x20b   :  { %v282_v9 = vsel %vm281_vm4, %v277_v7, %v279_v8 }
 0x20c   :  { %284 = vst.msk [vmem:[#allocation2] sm:$0xff] %vm283_vm5, %v282_v9 }
 0x20d   :  { %375 = shalt.err (!%p372_p4)
}
 0x20e   :  { %s376_s22 = scalar_lea.hbm %s489_s6, 128 }
 0x20f   :  { %p377_p5 = scmp.ne.s32.totalorder %s489_s6, %s376_s22  ;;  %p380_p6 = scmp.lt.u32.totalorder %s376_s22, %s489_s6 }
 0x211   :  { %p382_p7 = pnand %p380_p6, %p377_p5 }
 0x213   :  { %385 = shalt.err (!%p382_p7)
}
 0x214   :  { %294 = dma.vmem_to_hbm [thread:$0]  %s292_s5, 128, %s489_s6, [#allocation3]  }
 0x215   :  { %386 = dma.done.wait [#allocation3], 128  }
 0x216   :  { %387 = vsyncadd [#allocation3], 4294967168 }
 0x217   :  { %298 = vsyncpa [#allocation3], 1 }

</bundles_post_ra>
